<compile_context>
chip_gen: v5e
topology: v5e:2x2
jax: 0.10.0
libtpu: 0.0.40
codegen_flags: <defaults>
</compile_context>

<pallas_src>
import jax
import jax.numpy as jnp
from jax.experimental import pallas as pl
from jax.experimental.pallas import tpu as pltpu


def _round_up(n, m):
    return ((n + m - 1) // m) * m


def mlp_kernel(x_ref, w1_ref, b1_ref, w2_ref, b2_ref, w3t_ref, b3_ref, o_ref):
    x = x_ref[...]                                            # (TM, in) bf16

    # fc1 + ReLU  (bf16 MXU, f32 accumulate; bias/activation f32)
    h1 = jnp.dot(x, w1_ref[...], preferred_element_type=jnp.float32) + b1_ref[...]
    h1 = jnp.maximum(h1, 0.0)

    # Dropout(p=0.25): identity at inference (model.eval()) — matches PyTorch eval semantics.
    # TODO(synk): training-mode dropout would use pltpu.prng_seed / prng_random_bits.

    # fc2 + ReLU
    h2 = jnp.dot(h1.astype(jnp.bfloat16), w2_ref[...],
                 preferred_element_type=jnp.float32) + b2_ref[...]
    h2 = jnp.maximum(h2, 0.0)

    # fc3 (out_dim == 1): elementwise mul + cross-lane sum on VPU/XLU instead of a
    # tiny-N MXU matmul; b3 is a scalar read from SMEM.
    logits = jnp.sum(h2 * w3t_ref[...], axis=-1, keepdims=True) + b3_ref[0, 0]

    # Sigmoid: exp on the EUP, approx reciprocal also on the EUP slot.
    o_ref[...] = pl.reciprocal(1.0 + jnp.exp(-logits), approx=True)


def binary_classifier_forward(x, params, block_rows=512):
    w1, b1, w2, b2, w3, b3 = params
    batch, in_features = x.shape
    hidden = w1.shape[1]
    h2_dim = w2.shape[1]
    out_dim = w3.shape[1]
    assert out_dim == 1, "binary classifier: fc3 must produce a single sigmoid value"

    # Streamed operand and MXU weight operands in bf16; fc3 row + biases stay f32.
    x_bf = x.astype(jnp.bfloat16)
    w1_bf = w1.astype(jnp.bfloat16)
    w2_bf = w2.astype(jnp.bfloat16)
    w3t = w3.reshape(1, h2_dim).astype(jnp.float32)

    # Batch tile: multiple of 8 sublanes; pad batch up to a whole number of tiles.
    # TM=512 keeps the double-buffered x block well under the v7x 32 MiB scoped VMEM.
    tm = min(block_rows, _round_up(batch, 8))
    padded = _round_up(batch, tm)
    if padded != batch:
        x_bf = jnp.pad(x_bf, ((0, padded - batch), (0, 0)))
    grid = (padded // tm,)

    def resident(shape):  # whole array, same block every grid step -> stays in VMEM
        return pl.BlockSpec(shape, lambda i: (0, 0))

    out = pl.pallas_call(
        mlp_kernel,
        out_shape=jax.ShapeDtypeStruct((padded, out_dim), jnp.float32),
        grid=grid,
        in_specs=[
            pl.BlockSpec((tm, in_features), lambda i: (i, 0)),   # x: streamed / pipelined
            resident((in_features, hidden)),                     # w1
            resident((1, hidden)),                               # b1
            resident((hidden, h2_dim)),                          # w2
            resident((1, h2_dim)),                               # b2
            resident((1, h2_dim)),                               # w3^T row (f32)
            pl.BlockSpec(memory_space=pltpu.MemorySpace.SMEM),   # b3 scalar
        ],
        out_specs=pl.BlockSpec((tm, out_dim), lambda i: (i, 0)),
        compiler_params=pltpu.CompilerParams(
            dimension_semantics=("parallel",)),                  # 2 TCs on v7x
    )(x_bf, w1_bf, b1, w2_bf, b2, w3t, b3)

    return out[:batch]


def init_params(key, input_features, hidden_dim, output_dim):
    """Deterministic init mimicking nn.Linear's U(-1/sqrt(fan_in), 1/sqrt(fan_in))."""
    ks = jax.random.split(key, 6)
    h2 = hidden_dim // 2

    def lin(kw, kb, fan_in, fan_out):
        bound = 1.0 / jnp.sqrt(fan_in)
        w = jax.random.uniform(kw, (fan_in, fan_out), jnp.float32, -bound, bound)
        b = jax.random.uniform(kb, (1, fan_out), jnp.float32, -bound, bound)
        return w, b

    w1, b1 = lin(ks[0], ks[1], input_features, hidden_dim)
    w2, b2 = lin(ks[2], ks[3], hidden_dim, h2)
    w3, b3 = lin(ks[4], ks[5], h2, output_dim)
    return (w1, b1, w2, b2, w3, b3)


if __name__ == "__main__":
    # Small shapes consistent with the module: (batch, input_features) -> (batch, 1)
    batch = 8
    input_features = 32
    hidden_dim = 32
    output_dim = 1

    key = jax.random.PRNGKey(0)
    k_x, k_p = jax.random.split(key)

    x = jax.random.normal(k_x, (batch, input_features), dtype=jnp.float32)
    params = init_params(k_p, input_features, hidden_dim, output_dim)

    out = binary_classifier_forward(x, params)
    out = jax.block_until_ready(out)

    # Sanity: same math in plain f32 JAX (dropout is identity in eval mode).
    # Tolerance relaxed for bf16 matmul inputs + approx reciprocal in the sigmoid.
    w1, b1, w2, b2, w3, b3 = params
    ref = jax.nn.sigmoid(
        jnp.maximum(jnp.maximum(x @ w1 + b1, 0.0) @ w2 + b2, 0.0) @ w3 + b3
    )
    assert out.shape == (batch, output_dim)
    assert jnp.allclose(out, ref, atol=2e-2), "mismatch vs reference"

    print("KERNEL_OK")
</pallas_src>

<mosaic_0001>
module attributes {stable_mosaic.version = 11 : i64} {
  func.func @mlp_kernel(%arg0: i32, %arg1: memref<8x32xbf16, #tpu.memory_space<vmem>>, %arg2: memref<32x32xbf16, #tpu.memory_space<vmem>>, %arg3: memref<1x32xf32, #tpu.memory_space<vmem>>, %arg4: memref<32x16xbf16, #tpu.memory_space<vmem>>, %arg5: memref<1x16xf32, #tpu.memory_space<vmem>>, %arg6: memref<1x16xf32, #tpu.memory_space<vmem>>, %arg7: memref<1x1xf32, #tpu.memory_space<smem>>, %arg8: memref<8x1xf32, #tpu.memory_space<vmem>>) attributes {dimension_semantics = [#tpu.dimension_semantics<parallel>], iteration_bounds = array<i64: 1>, scalar_prefetch = 0 : i64, scratch_operands = 0 : i64, tpu.core_type = #tpu.core_type<tc>, window_params = [{transform_indices = @transform_0, window_bounds = array<i64: 8, 32>}, {pipeline_mode = #tpu.pipeline_mode<synchronous>, transform_indices = @transform_1, window_bounds = array<i64: 32, 32>}, {pipeline_mode = #tpu.pipeline_mode<synchronous>, transform_indices = @transform_2, window_bounds = array<i64: 1, 32>}, {pipeline_mode = #tpu.pipeline_mode<synchronous>, transform_indices = @transform_3, window_bounds = array<i64: 32, 16>}, {pipeline_mode = #tpu.pipeline_mode<synchronous>, transform_indices = @transform_4, window_bounds = array<i64: 1, 16>}, {pipeline_mode = #tpu.pipeline_mode<synchronous>, transform_indices = @transform_5, window_bounds = array<i64: 1, 16>}, {transform_indices = @transform_6, window_bounds = array<i64: 1, 1>}, {transform_indices = @transform_7, window_bounds = array<i64: 8, 1>}]} {
    %c0 = arith.constant 0 : index
    %c0_0 = arith.constant 0 : index
    %0 = vector.load %arg1[%c0, %c0_0] : memref<8x32xbf16, #tpu.memory_space<vmem>>, vector<8x32xbf16>
    %c0_1 = arith.constant 0 : index
    %c0_2 = arith.constant 0 : index
    %1 = vector.load %arg2[%c0_1, %c0_2] : memref<32x32xbf16, #tpu.memory_space<vmem>>, vector<32x32xbf16>
    %cst = arith.constant dense<0.000000e+00> : vector<8x32xf32>
    %2 = tpu.matmul %0, %1, %cst {dimension_numbers = #tpu.dot_dimension_numbers<[1], [0], [0], [1], [0, 0, 1, 1], [], []>} : vector<8x32xbf16>, vector<32x32xbf16>, vector<8x32xf32> -> vector<8x32xf32>
    %c0_3 = arith.constant 0 : index
    %c0_4 = arith.constant 0 : index
    %3 = vector.load %arg3[%c0_3, %c0_4] : memref<1x32xf32, #tpu.memory_space<vmem>>, vector<1x32xf32>
    %4 = vector.broadcast %3 : vector<1x32xf32> to vector<8x32xf32>
    %5 = arith.addf %2, %4 : vector<8x32xf32>
    %cst_5 = arith.constant 0.000000e+00 : f32
    %6 = vector.broadcast %cst_5 : f32 to vector<8x32xf32>
    %7 = arith.maximumf %5, %6 : vector<8x32xf32>
    %8 = arith.truncf %7 : vector<8x32xf32> to vector<8x32xbf16>
    %c0_6 = arith.constant 0 : index
    %c0_7 = arith.constant 0 : index
    %9 = vector.load %arg4[%c0_6, %c0_7] : memref<32x16xbf16, #tpu.memory_space<vmem>>, vector<32x16xbf16>
    %cst_8 = arith.constant dense<0.000000e+00> : vector<8x16xf32>
    %10 = tpu.matmul %8, %9, %cst_8 {dimension_numbers = #tpu.dot_dimension_numbers<[1], [0], [0], [1], [0, 0, 1, 1], [], []>} : vector<8x32xbf16>, vector<32x16xbf16>, vector<8x16xf32> -> vector<8x16xf32>
    %c0_9 = arith.constant 0 : index
    %c0_10 = arith.constant 0 : index
    %11 = vector.load %arg5[%c0_9, %c0_10] : memref<1x16xf32, #tpu.memory_space<vmem>>, vector<1x16xf32>
    %12 = vector.broadcast %11 : vector<1x16xf32> to vector<8x16xf32>
    %13 = arith.addf %10, %12 : vector<8x16xf32>
    %cst_11 = arith.constant 0.000000e+00 : f32
    %14 = vector.broadcast %cst_11 : f32 to vector<8x16xf32>
    %15 = arith.maximumf %13, %14 : vector<8x16xf32>
    %c0_12 = arith.constant 0 : index
    %c0_13 = arith.constant 0 : index
    %16 = vector.load %arg6[%c0_12, %c0_13] : memref<1x16xf32, #tpu.memory_space<vmem>>, vector<1x16xf32>
    %17 = vector.broadcast %16 : vector<1x16xf32> to vector<8x16xf32>
    %18 = arith.mulf %15, %17 : vector<8x16xf32>
    %cst_14 = arith.constant dense<0.000000e+00> : vector<8xf32>
    %19 = vector.multi_reduction <add>, %18, %cst_14 [1] : vector<8x16xf32> to vector<8xf32>
    %20 = vector.shape_cast %19 : vector<8xf32> to vector<8x1xf32>
    %c0_15 = arith.constant 0 : index
    %c0_16 = arith.constant 0 : index
    %21 = memref.load %arg7[%c0_15, %c0_16] : memref<1x1xf32, #tpu.memory_space<smem>>
    %22 = vector.broadcast %21 : f32 to vector<8x1xf32>
    %23 = arith.addf %20, %22 : vector<8x1xf32>
    %cst_17 = arith.constant 0.000000e+00 : f32
    %24 = vector.broadcast %cst_17 : f32 to vector<8x1xf32>
    %25 = arith.subf %24, %23 : vector<8x1xf32>
    %26 = math.exp %25 : vector<8x1xf32>
    %cst_18 = arith.constant 1.000000e+00 : f32
    %27 = vector.broadcast %cst_18 : f32 to vector<8x1xf32>
    %28 = arith.addf %27, %26 : vector<8x1xf32>
    %29 = tpu.reciprocal %28 {approx = true} : vector<8x1xf32> -> vector<8x1xf32>
    %c0_19 = arith.constant 0 : index
    %c0_20 = arith.constant 0 : index
    %30 = vector.load %arg8[%c0_19, %c0_20] : memref<8x1xf32, #tpu.memory_space<vmem>>, vector<8x1xf32>
    tpu.vector_store %arg8[%c0_19, %c0_20], %29 {strides = array<i32>} : memref<8x1xf32, #tpu.memory_space<vmem>>, vector<8x1xf32>,
    return
  }
  func.func @transform_0(%arg0: i32) -> (i32, i32) {
    %c0_i32 = arith.constant 0 : i32
    %c0_i32_0 = arith.constant 0 : i32
    return %arg0, %c0_i32 : i32, i32
  }
  func.func @transform_1(%arg0: i32) -> (i32, i32) {
    %c0_i32 = arith.constant 0 : i32
    %c0_i32_0 = arith.constant 0 : i32
    %c0_i32_1 = arith.constant 0 : i32
    return %c0_i32, %c0_i32_0 : i32, i32
  }
  func.func @transform_2(%arg0: i32) -> (i32, i32) {
    %c0_i32 = arith.constant 0 : i32
    %c0_i32_0 = arith.constant 0 : i32
    %c0_i32_1 = arith.constant 0 : i32
    return %c0_i32, %c0_i32_0 : i32, i32
  }
  func.func @transform_3(%arg0: i32) -> (i32, i32) {
    %c0_i32 = arith.constant 0 : i32
    %c0_i32_0 = arith.constant 0 : i32
    %c0_i32_1 = arith.constant 0 : i32
    return %c0_i32, %c0_i32_0 : i32, i32
  }
  func.func @transform_4(%arg0: i32) -> (i32, i32) {
    %c0_i32 = arith.constant 0 : i32
    %c0_i32_0 = arith.constant 0 : i32
    %c0_i32_1 = arith.constant 0 : i32
    return %c0_i32, %c0_i32_0 : i32, i32
  }
  func.func @transform_5(%arg0: i32) -> (i32, i32) {
    %c0_i32 = arith.constant 0 : i32
    %c0_i32_0 = arith.constant 0 : i32
    %c0_i32_1 = arith.constant 0 : i32
    return %c0_i32, %c0_i32_0 : i32, i32
  }
  func.func @transform_6(%arg0: i32) -> (i32, i32) {
    %c0_i32 = arith.constant 0 : i32
    %c0_i32_0 = arith.constant 0 : i32
    %c0_i32_1 = arith.constant 0 : i32
    return %c0_i32, %c0_i32_0 : i32, i32
  }
  func.func @transform_7(%arg0: i32) -> (i32, i32) {
    %c0_i32 = arith.constant 0 : i32
    %c0_i32_0 = arith.constant 0 : i32
    return %arg0, %c0_i32 : i32, i32
  }
}

</mosaic_0001>

<bundles_post_ra>
// kernel: tpu_custom_call.1
= control target key start
LH: loop header
LB: loop body
LE: loop exit
PB: predicated region body
PF: predicated region fallthrough
CT: control target
= control target key end

     0   :  { %vm49_vm0 = vcmask 261120   ;;  %vm110_vm1 = vcmask 130048   ;;  %vm122_vm2 = vcmask 7168   ;;  %s227_s1 = inlined_call_operand.vmem [shape: bf16[32,32], index: 1, kind: input, shape index: {}]   ;;  %s228_s2 = inlined_call_operand.vmem [shape: f32[1,32], index: 2, kind: input, shape index: {}]   ;;  %s229_s0 = inlined_call_operand.vmem [shape: bf16[8,32], index: 0, kind: input, shape index: {}]   ;;  %s230_s4 = inlined_call_operand.vmem [shape: f32[1,16], index: 4, kind: input, shape index: {}]   ;;  %s231_s3 = inlined_call_operand.vmem [shape: bf16[32,16], index: 3, kind: input, shape index: {}]   ;;  %s232_s5 = inlined_call_operand.vmem [shape: f32[1,16], index: 5, kind: input, shape index: {}]   ;;  %s233_s6 = inlined_call_operand.<no memory space> [shape: f32[1,1], index: 6, kind: input, shape index: {}]   ;;  %s234_s7 = inlined_call_operand.vmem [shape: f32[8,1], index: 7, kind: output, shape index: {}]  }
   0x1   :  { %v147_v0 = vld [vmem:[%s227_s1 + $0x8] sm:$0xff]  ;;  %v146_v1 = vld [vmem:[%s227_s1] sm:$0xff]  ;;  %v115_v19 = vstv %s233_s6 }
   0x2   :  { %59 = vmatpush.bf16.msra.mxu0 %v147_v0  ;;  %v28_v2 = vld [vmem:[%s229_s0] sm:$0xf]  ;;  %v149_v3 = vld [vmem:[%s231_s3 + $0x8] sm:$0xff] }
   0x3   :  { %97 = vmatpush.bf16.msra.mxu1 %v149_v3  ;;  %v148_v4 = vld [vmem:[%s231_s3] sm:$0xff] }
   0x4   :  { %v150_v5 = vld [vmem:[%s228_s2] ss:$0 sm:$0xff] }
   0x5   :  { %v151_v11 = vld [vmem:[%s230_s4] ss:$0 sm:$0xff] }
   0x6   :  { %60 = vmatpush.bf16.msra.mxu0 %v146_v1  ;;  %v152_v14 = vld [vmem:[%s232_s5] ss:$0 sm:$0xff] }
   0x7   :  { %98 = vmatpush.bf16.msra.mxu1 %v148_v4 }
   0x9   :  { %136 = vmatmul.msk.bf16.vlgmr.msra.gmra.mxu0 %vm49_vm0, %v28_v2 }
  0x86   :  { %v62_v6 = vpop.f32.mrf.mxu0 }
  0x87   :  { %v63_v7 = vadd.f32 %v150_v5, %v62_v6 }
  0x89   :  { %v66_v8 = vmax.f32 %v63_v7, 0.0 }
  0x8b   :  { %v67_v9 = vpack.c.bf16 %v66_v8, %v66_v8 }
  0x8d   :  { %145 = vmatmul.msk.bf16.vlgmr.msra.gmra.mxu1 %vm49_vm0, %v67_v9 }
  0x8e   :  { %v64_v10 = vpop.f32.mrf.mxu0 }
 0x10a   :  { %v100_v12 = vpop.f32.mrf.mxu1 }
 0x10b   :  { %v101_v13 = vadd.f32 %v151_v11, %v100_v12 }
 0x10d   :  { %v104_v15 = vmax.f32 %v101_v13, 0.0 }
 0x10f   :  { %v109_v16 = vmul.f32 %v152_v14, %v104_v15 }
 0x111   :  { %v111_v17 = vsel %vm110_vm1, %v109_v16, 0.0 }
 0x112   :  { %v102_v18 = vpop.f32.mrf.mxu1  ;;  %112 = vadd.xlane.f32.xlu0 %v111_v17 }
 0x185   :  { %v113_v20 = vpop.xlane.xlu0 %112 }
 0x186   :  { %v116_v21 = vadd.f32 %v115_v19, %v113_v20 }
 0x188   :  { %v117_v22 = vsub.f32 0.0, %v116_v21 }
 0x18a   :  { %v118_v23 = vmul.f32 1.442695, %v117_v22 }
 0x18c   :  { %153 = vpow2.f32 %v118_v23 }
 0x192   :  { %v154_v24 = vpop.eup %153 }
 0x193   :  { %v120_v25 = vadd.f32 1.0, %v154_v24 }
 0x195   :  { %155 = vrcp.f32 %v120_v25 }
 0x19b   :  { %v156_v26 = vpop.eup %155 }
 0x19c   :  { %123 = vst.msk [vmem:[%s234_s7] sm:$0xff] %vm122_vm2, %v156_v26 }

</bundles_post_ra>
